<compile_context>
chip_gen: v7x
topology: tpu7x:2x2x1
jax: 0.10.0
libtpu: 0.0.40
codegen_flags: <defaults>
</compile_context>

<pallas_src>
import math
from functools import lru_cache, partial

import jax
import jax.numpy as jnp
from jax import lax
from jax.experimental import pallas as pl
from jax.experimental.pallas import tpu as pltpu


# ---------------------------------------------------------------------------
# Helpers
# ---------------------------------------------------------------------------
def _pick_tile(dim, candidates):
    """Largest candidate that evenly divides `dim`, else the full dim.

    Candidates are multiples of (8, 128), so the resulting block always
    satisfies the TPU (8, 128) block-shape constraint; the full-dim fallback
    is always legal as well.
    """
    for c in candidates:
        if c <= dim and dim % c == 0:
            return c
    return dim


@lru_cache(maxsize=None)
def _vmem_limit_bytes():
    """~85% of physical VMEM (≈108 MiB v5e/v6e, ≈54 MiB v7x), safe fallback."""
    cap = 64 << 20
    try:
        info = pltpu.get_tpu_info()
        cap = int(getattr(info, "vmem_capacity_bytes", cap)) or cap
    except Exception:
        pass
    limit = int(cap * 0.85)
    return max(32 << 20, min(limit, 112 << 20))


# ---------------------------------------------------------------------------
# Tiled linear projection:  (M, K) @ (K, N) + b
# ---------------------------------------------------------------------------
def _linear_kernel(x_ref, w_ref, b_ref, o_ref, acc_ref):
    k_step = pl.program_id(2)

    @pl.when(k_step == 0)
    def _():
        acc_ref[...] = jnp.zeros_like(acc_ref)

    # Cast the activation tile to the (possibly lower precision) weight dtype
    # inside the kernel: avoids a separate full-tensor cast pass through HBM.
    acc_ref[...] += jnp.dot(
        x_ref[...].astype(w_ref.dtype), w_ref[...],
        preferred_element_type=jnp.float32,
    )

    @pl.when(k_step == pl.num_programs(2) - 1)
    def _():
        o_ref[...] = (acc_ref[...] + b_ref[...]).astype(o_ref.dtype)


def pallas_linear(x2d, w, b, *, out_dtype):
    M, K = x2d.shape
    N = w.shape[1]
    tm = _pick_tile(M, (512, 256, 128))
    tn = _pick_tile(N, (512, 256, 128))
    tk = _pick_tile(K, (512, 256, 128))
    grid = (M // tm, N // tn, K // tk)
    return pl.pallas_call(
        _linear_kernel,
        out_shape=jax.ShapeDtypeStruct((M, N), out_dtype),
        grid_spec=pltpu.PrefetchScalarGridSpec(
            num_scalar_prefetch=0,
            grid=grid,
            in_specs=[
                pl.BlockSpec((tm, tk), lambda i, j, k: (i, k)),
                pl.BlockSpec((tk, tn), lambda i, j, k: (k, j)),
                pl.BlockSpec((1, tn), lambda i, j, k: (0, j)),
            ],
            out_specs=pl.BlockSpec((tm, tn), lambda i, j, k: (i, j)),
            scratch_shapes=[pltpu.VMEM((tm, tn), jnp.float32)],
        ),
        compiler_params=pltpu.CompilerParams(
            dimension_semantics=("parallel", "parallel", "arbitrary"),
            vmem_limit_bytes=_vmem_limit_bytes(),
        ),
    )(x2d, w, b.reshape(1, N).astype(jnp.float32))


# ---------------------------------------------------------------------------
# Attention: all heads of one batch (query tile) per grid step
# ---------------------------------------------------------------------------
def _attn_compute(q, k, v, keep, o_ref, *, n_head, d_k, d_v, scale):
    # q: (tq, H*d_k), k: (S, H*d_k), v: (S, H*d_v)
    # keep: None, (tq, S) bool, or (1, S) bool (broadcast over query rows).
    neg = jnp.float32(-1000000000.0)
    # Fold 1/sqrt(d_k) into q once (python-float scale keeps q's dtype).
    q = q * scale
    # Group heads so each output store is as lane-dense as possible (>=128).
    hpg = max(1, min(n_head, -(-128 // d_v)))
    for g0 in range(0, n_head, hpg):               # unrolled at trace time
        g1 = min(g0 + hpg, n_head)
        outs = []
        for h in range(g0, g1):
            qh = q[:, h * d_k:(h + 1) * d_k]
            kh = k[:, h * d_k:(h + 1) * d_k]
            vh = v[:, h * d_v:(h + 1) * d_v]
            # q @ k^T without materializing the transpose.
            s = lax.dot_general(
                qh, kh, (((1,), (1,)), ((), ())),
                preferred_element_type=jnp.float32,
            )                                       # (tq, S) f32
            if keep is not None:
                s = jnp.where(keep, s, neg)         # masked_fill(mask == False)
            # Numerically stable softmax in f32; normalize AFTER the PV matmul
            # (flash ordering) so the divide is a (tq, d_v) multiply.
            s_max = jnp.max(s, axis=-1, keepdims=True)
            e = jnp.exp(s - s_max)
            inv = pl.reciprocal(jnp.sum(e, axis=-1, keepdims=True), approx=True)
            oh = jnp.dot(e.astype(vh.dtype), vh,
                         preferred_element_type=jnp.float32) * inv
            outs.append(oh)
        blk = outs[0] if len(outs) == 1 else jnp.concatenate(outs, axis=-1)
        if g0 == 0 and g1 == n_head:
            o_ref[0] = blk.astype(o_ref.dtype)
        else:
            o_ref[0, :, g0 * d_v:g1 * d_v] = blk.astype(o_ref.dtype)


def _attn_kernel_masked(q_ref, k_ref, v_ref, m_ref, o_ref, *,
                        n_head, d_k, d_v, scale):
    _attn_compute(q_ref[0], k_ref[0], v_ref[0], m_ref[0] != 0, o_ref,
                  n_head=n_head, d_k=d_k, d_v=d_v, scale=scale)


def _attn_kernel_nomask(q_ref, k_ref, v_ref, o_ref, *,
                        n_head, d_k, d_v, scale):
    _attn_compute(q_ref[0], k_ref[0], v_ref[0], None, o_ref,
                  n_head=n_head, d_k=d_k, d_v=d_v, scale=scale)


def pallas_attention(xq, xk, xv, pad_mask, *, n_head, d_k, d_v):
    B, S, _ = xq.shape
    hdk = n_head * d_k
    hdv = n_head * d_v
    # Cap tq at 256 (keeps the whole-KV path inside raised VMEM budgets).
    tq = _pick_tile(S, (256, 128))
    # v7x has 2 TensorCores: make sure the grid exposes >= 2 programs.
    while (B * (S // tq) < 2 and tq >= 16
           and (tq // 2) % 8 == 0 and S % (tq // 2) == 0):
        tq //= 2
    grid = (B, S // tq)
    scale = 1.0 / math.sqrt(d_k)

    q_spec = pl.BlockSpec((1, tq, hdk), lambda b, qi: (b, qi, 0))
    k_spec = pl.BlockSpec((1, S, hdk), lambda b, qi: (b, 0, 0))
    v_spec = pl.BlockSpec((1, S, hdv), lambda b, qi: (b, 0, 0))
    o_spec = pl.BlockSpec((1, tq, hdv), lambda b, qi: (b, qi, 0))
    out_shape = jax.ShapeDtypeStruct((B, S, hdv), xq.dtype)
    cparams = pltpu.CompilerParams(
        dimension_semantics=("parallel", "parallel"),
        vmem_limit_bytes=_vmem_limit_bytes(),
    )
    kw = dict(n_head=n_head, d_k=d_k, d_v=d_v, scale=scale)

    if pad_mask is None:
        # No-mask path: no mask operand at all (no HBM alloc / mask DMA).
        return pl.pallas_call(
            partial(_attn_kernel_nomask, **kw),
            out_shape=out_shape,
            grid=grid,
            in_specs=[q_spec, k_spec, v_spec],
            out_specs=o_spec,
            compiler_params=cparams,
        )(xq, xk, xv)

    # int8 mask (nonzero == keep): 4x less HBM/VMEM traffic than int32.
    mask = (pad_mask != 0).astype(jnp.int8)
    if mask.ndim == 2:
        # (B, S) key-padding mask: one S-wide row per batch, broadcast over
        # the query rows inside the kernel (tiny mask DMA per step).
        mask = mask.reshape(B, 1, S)
        m_spec = pl.BlockSpec((1, 1, S), lambda b, qi: (b, 0, 0))
    else:
        # General (B, S, S) mask, tiled along the query axis.
        m_spec = pl.BlockSpec((1, tq, S), lambda b, qi: (b, qi, 0))

    return pl.pallas_call(
        partial(_attn_kernel_masked, **kw),
        out_shape=out_shape,
        grid=grid,
        in_specs=[q_spec, k_spec, v_spec, m_spec],
        out_specs=o_spec,
        compiler_params=cparams,
    )(xq, xk, xv, mask)


# ---------------------------------------------------------------------------
# Parameter init / one-time preparation (cast + QKV fusion outside forward)
# ---------------------------------------------------------------------------
def init_params(key, dim_model, d_k, d_v, n_head):
    def linear_init(key, fan_in, fan_out):
        kw, kb = jax.random.split(key)
        bound = 1.0 / math.sqrt(fan_in)
        w = jax.random.uniform(kw, (fan_in, fan_out), jnp.float32, -bound, bound)
        b = jax.random.uniform(kb, (fan_out,), jnp.float32, -bound, bound)
        return w, b

    k1, k2, k3, k4 = jax.random.split(key, 4)
    w_q, b_q = linear_init(k1, dim_model, n_head * d_k)
    w_k, b_k = linear_init(k2, dim_model, n_head * d_k)
    w_v, b_v = linear_init(k3, dim_model, n_head * d_v)
    w_o, b_o = linear_init(k4, n_head * d_v, dim_model)
    return dict(w_q=w_q, b_q=b_q, w_k=w_k, b_k=b_k,
                w_v=w_v, b_v=b_v, w_o=w_o, b_o=b_o)


def prepare_params(params, *, compute_dtype=jnp.bfloat16, fuse_qkv=True):
    """Cast weights to the compute dtype and pre-fuse QKV once (not per call)."""
    cd = compute_dtype
    p = dict(
        w_q=params["w_q"].astype(cd), b_q=params["b_q"].astype(jnp.float32),
        w_k=params["w_k"].astype(cd), b_k=params["b_k"].astype(jnp.float32),
        w_v=params["w_v"].astype(cd), b_v=params["b_v"].astype(jnp.float32),
        w_o=params["w_o"].astype(cd), b_o=params["b_o"].astype(jnp.float32),
    )
    if fuse_qkv:
        p["w_qkv"] = jnp.concatenate(
            [params["w_q"], params["w_k"], params["w_v"]], axis=1).astype(cd)
        p["b_qkv"] = jnp.concatenate(
            [params["b_q"], params["b_k"], params["b_v"]]).astype(jnp.float32)
    return p


# ---------------------------------------------------------------------------
# Module forward (glue in plain JAX, compute in Pallas)
# ---------------------------------------------------------------------------
def mha_forward(params, q, k, v, pad_mask, *, n_head, d_k, d_v):
    """params must come from prepare_params (weights carry the compute dtype)."""
    B, S, D = q.shape
    hdk = n_head * d_k
    hdv = n_head * d_v
    cd = params["w_q"].dtype

    if (q is k) and (k is v) and ("w_qkv" in params):
        # Self-attention: single fused QKV matmul (weights pre-concatenated).
        qkv = pallas_linear(q.reshape(B * S, D), params["w_qkv"],
                            params["b_qkv"], out_dtype=cd)
        xq = qkv[:, :hdk]
        xk = qkv[:, hdk:2 * hdk]
        xv = qkv[:, 2 * hdk:]
    else:
        xq = pallas_linear(q.reshape(B * S, D), params["w_q"], params["b_q"],
                           out_dtype=cd)
        xk = pallas_linear(k.reshape(B * S, D), params["w_k"], params["b_k"],
                           out_dtype=cd)
        xv = pallas_linear(v.reshape(B * S, D), params["w_v"], params["b_v"],
                           out_dtype=cd)

    # Keep the head-interleaved (B, S, H*d) layout end-to-end: the attention
    # kernel slices heads out of the lane dimension internally, so there is
    # no transpose(0, 2, 1, 3) HBM round trip on either side of attention.
    xq = xq.reshape(B, S, hdk)
    xk = xk.reshape(B, S, hdk)
    xv = xv.reshape(B, S, hdv)

    attn = pallas_attention(xq, xk, xv, pad_mask,
                            n_head=n_head, d_k=d_k, d_v=d_v)

    out = pallas_linear(attn.reshape(B * S, hdv),
                        params["w_o"], params["b_o"],
                        out_dtype=q.dtype).reshape(B, S, D)
    return out, q


# ---------------------------------------------------------------------------
# Pure-JAX reference (mirrors the PyTorch forward, dropout = identity)
# ---------------------------------------------------------------------------
def reference_forward(params, q, k, v, pad_mask, *, n_head, d_k, d_v):
    B, S, D = q.shape

    def lin(x, w, b):
        return x @ w + b

    xq = lin(q, params["w_q"], params["b_q"]).reshape(B, S, n_head, d_k).transpose(0, 2, 1, 3)
    xk = lin(k, params["w_k"], params["b_k"]).reshape(B, S, n_head, d_k).transpose(0, 2, 1, 3)
    xv = lin(v, params["w_v"], params["b_v"]).reshape(B, S, n_head, d_v).transpose(0, 2, 1, 3)

    s = jnp.einsum("bhqd,bhkd->bhqk", xq, xk) / math.sqrt(d_k)
    if pad_mask is not None:
        s = jnp.where(pad_mask[:, None].astype(bool), s, jnp.float32(-1000000000.0))
    p = jax.nn.softmax(s, axis=-1)
    o = jnp.einsum("bhqk,bhkd->bhqd", p, xv)
    o = o.transpose(0, 2, 1, 3).reshape(B, S, n_head * d_v)
    return o @ params["w_o"] + params["b_o"], q


# ---------------------------------------------------------------------------
if __name__ == "__main__":
    B, S = 2, 8
    dim_model, d_k, d_v, n_head = 32, 8, 8, 4
    d_prob = 0.1  # dropout prob (identity in eval mode)

    key = jax.random.PRNGKey(0)
    kp, kq, kk_, kv_ = jax.random.split(key, 4)

    params = init_params(kp, dim_model, d_k, d_v, n_head)
    q = jax.random.normal(kq, (B, S, dim_model), jnp.float32)
    k = jax.random.normal(kk_, (B, S, dim_model), jnp.float32)
    v = jax.random.normal(kv_, (B, S, dim_model), jnp.float32)

    # padding mask: batch 0 attends to all 8 keys, batch 1 only to first 5
    lengths = jnp.array([8, 5], jnp.int32)
    key_valid = jnp.arange(S)[None, :] < lengths[:, None]          # (B, S)
    pad_mask = jnp.broadcast_to(key_valid[:, None, :], (B, S, S))  # (B, S, S)

    ref_out, _ = reference_forward(
        params, q, k, v, pad_mask, n_head=n_head, d_k=d_k, d_v=d_v)

    params_f32 = prepare_params(params, compute_dtype=jnp.float32)
    params_bf16 = prepare_params(params, compute_dtype=jnp.bfloat16)

    # 1) f32 compute mode, masked cross-attention (structural correctness).
    out32, q_out = mha_forward(params_f32, q, k, v, pad_mask,
                               n_head=n_head, d_k=d_k, d_v=d_v)
    out32 = jax.block_until_ready(out32)
    assert out32.shape == (B, S, dim_model)
    err32 = float(jnp.max(jnp.abs(out32 - ref_out)))
    assert jnp.allclose(out32, ref_out, atol=5e-2, rtol=5e-2), err32
    assert jnp.array_equal(q_out, q)

    # 2) bf16 compute mode (MXU-native operands, f32 accumulation/softmax).
    out16, _ = mha_forward(params_bf16, q, k, v, pad_mask,
                           n_head=n_head, d_k=d_k, d_v=d_v)
    out16 = jax.block_until_ready(out16)
    err16 = float(jnp.max(jnp.abs(out16 - ref_out)))
    assert jnp.allclose(out16, ref_out, atol=1.5e-1, rtol=1.5e-1), err16

    # 3) Self-attention, no mask: exercises fused QKV + mask-free kernel.
    ref_nm, _ = reference_forward(params, q, q, q, None,
                                  n_head=n_head, d_k=d_k, d_v=d_v)
    out_nm, _ = mha_forward(params_f32, q, q, q, None,
                            n_head=n_head, d_k=d_k, d_v=d_v)
    out_nm = jax.block_until_ready(out_nm)
    err_nm = float(jnp.max(jnp.abs(out_nm - ref_nm)))
    assert jnp.allclose(out_nm, ref_nm, atol=5e-2, rtol=5e-2), err_nm

    # 4) 2-D key-padding mask path ((B, S) -> broadcast in-kernel), same result.
    out2d, _ = mha_forward(params_f32, q, k, v, key_valid,
                           n_head=n_head, d_k=d_k, d_v=d_v)
    out2d = jax.block_until_ready(out2d)
    err2d = float(jnp.max(jnp.abs(out2d - ref_out)))
    assert jnp.allclose(out2d, ref_out, atol=5e-2, rtol=5e-2), err2d

    print("KERNEL_OK")
</pallas_src>

<mosaic_0001>
module attributes {stable_mosaic.version = 11 : i64} {
  func.func @_linear_kernel(%arg0: i32, %arg1: i32, %arg2: i32, %arg3: memref<16x32xf32, #tpu.memory_space<vmem>>, %arg4: memref<32x32xf32, #tpu.memory_space<vmem>>, %arg5: memref<1x32xf32, #tpu.memory_space<vmem>>, %arg6: memref<16x32xf32, #tpu.memory_space<vmem>>, %arg7: memref<16x32xf32, #tpu.memory_space<vmem>>) attributes {dimension_semantics = [#tpu.dimension_semantics<parallel>, #tpu.dimension_semantics<parallel>, #tpu.dimension_semantics<arbitrary>], iteration_bounds = array<i64: 1, 1, 1>, scalar_prefetch = 0 : i64, scratch_operands = 1 : i64, tpu.core_type = #tpu.core_type<tc>, window_params = [{transform_indices = @transform_0, window_bounds = array<i64: 16, 32>}, {transform_indices = @transform_1, window_bounds = array<i64: 32, 32>}, {transform_indices = @transform_2, window_bounds = array<i64: 1, 32>}, {transform_indices = @transform_3, window_bounds = array<i64: 16, 32>}]} {
    %c0_i32 = arith.constant 0 : i32
    %0 = arith.cmpi eq, %arg2, %c0_i32 : i32
    %1 = arith.extui %0 : i1 to i32
    %c0_i32_0 = arith.constant 0 : i32
    %2 = arith.cmpi ne, %1, %c0_i32_0 : i32
    scf.if %2 {
      %cst_10 = arith.constant 0.000000e+00 : f32
      %12 = vector.broadcast %cst_10 : f32 to vector<16x32xf32>
      %c0_11 = arith.constant 0 : index
      %c0_12 = arith.constant 0 : index
      %13 = vector.load %arg7[%c0_11, %c0_12] : memref<16x32xf32, #tpu.memory_space<vmem>>, vector<16x32xf32>
      tpu.vector_store %arg7[%c0_11, %c0_12], %12 {strides = array<i32>} : memref<16x32xf32, #tpu.memory_space<vmem>>, vector<16x32xf32>,
    } else {
    }
    %c0 = arith.constant 0 : index
    %c0_1 = arith.constant 0 : index
    %3 = vector.load %arg7[%c0, %c0_1] : memref<16x32xf32, #tpu.memory_space<vmem>>, vector<16x32xf32>
    %c0_2 = arith.constant 0 : index
    %c0_3 = arith.constant 0 : index
    %4 = vector.load %arg3[%c0_2, %c0_3] : memref<16x32xf32, #tpu.memory_space<vmem>>, vector<16x32xf32>
    %c0_4 = arith.constant 0 : index
    %c0_5 = arith.constant 0 : index
    %5 = vector.load %arg4[%c0_4, %c0_5] : memref<32x32xf32, #tpu.memory_space<vmem>>, vector<32x32xf32>
    %cst = arith.constant dense<0.000000e+00> : vector<16x32xf32>
    %6 = tpu.matmul %4, %5, %cst {dimension_numbers = #tpu.dot_dimension_numbers<[1], [0], [0], [1], [0, 0, 1, 1], [], []>} : vector<16x32xf32>, vector<32x32xf32>, vector<16x32xf32> -> vector<16x32xf32>
    %7 = arith.addf %3, %6 : vector<16x32xf32>
    %c0_6 = arith.constant 0 : index
    %c0_7 = arith.constant 0 : index
    %8 = vector.load %arg7[%c0_6, %c0_7] : memref<16x32xf32, #tpu.memory_space<vmem>>, vector<16x32xf32>
    tpu.vector_store %arg7[%c0_6, %c0_7], %7 {strides = array<i32>} : memref<16x32xf32, #tpu.memory_space<vmem>>, vector<16x32xf32>,
    %c0_i32_8 = arith.constant 0 : i32
    %9 = arith.cmpi eq, %arg2, %c0_i32_8 : i32
    %10 = arith.extui %9 : i1 to i32
    %c0_i32_9 = arith.constant 0 : i32
    %11 = arith.cmpi ne, %10, %c0_i32_9 : i32
    scf.if %11 {
      %c0_10 = arith.constant 0 : index
      %c0_11 = arith.constant 0 : index
      %12 = vector.load %arg7[%c0_10, %c0_11] : memref<16x32xf32, #tpu.memory_space<vmem>>, vector<16x32xf32>
      %c0_12 = arith.constant 0 : index
      %c0_13 = arith.constant 0 : index
      %13 = vector.load %arg5[%c0_12, %c0_13] : memref<1x32xf32, #tpu.memory_space<vmem>>, vector<1x32xf32>
      %14 = vector.broadcast %13 : vector<1x32xf32> to vector<16x32xf32>
      %15 = arith.addf %12, %14 : vector<16x32xf32>
      %c0_14 = arith.constant 0 : index
      %c0_15 = arith.constant 0 : index
      %16 = vector.load %arg6[%c0_14, %c0_15] : memref<16x32xf32, #tpu.memory_space<vmem>>, vector<16x32xf32>
      tpu.vector_store %arg6[%c0_14, %c0_15], %15 {strides = array<i32>} : memref<16x32xf32, #tpu.memory_space<vmem>>, vector<16x32xf32>,
    } else {
    }
    return
  }
  func.func @transform_0(%arg0: i32, %arg1: i32, %arg2: i32) -> (i32, i32) {
    %c0_i32 = arith.constant 0 : i32
    return %arg0, %arg2 : i32, i32
  }
  func.func @transform_1(%arg0: i32, %arg1: i32, %arg2: i32) -> (i32, i32) {
    %c0_i32 = arith.constant 0 : i32
    return %arg2, %arg1 : i32, i32
  }
  func.func @transform_2(%arg0: i32, %arg1: i32, %arg2: i32) -> (i32, i32) {
    %c0_i32 = arith.constant 0 : i32
    %c0_i32_0 = arith.constant 0 : i32
    return %c0_i32, %arg1 : i32, i32
  }
  func.func @transform_3(%arg0: i32, %arg1: i32, %arg2: i32) -> (i32, i32) {
    %c0_i32 = arith.constant 0 : i32
    return %arg0, %arg1 : i32, i32
  }
}

</mosaic_0001>

<bundles_post_ra>
// kernel: tpu_custom_call.1
= control target key start
LH: loop header
LB: loop body
LE: loop exit
PB: predicated region body
PF: predicated region fallthrough
CT: control target
= control target key end

     0   :  { %8 = vsyncpa [#allocation4], 0  ;;  %s366_s0 = inlined_call_operand.hbm [shape: f32[16,32], index: 0, kind: input, shape index: {}]   ;;  %s367_s1 = inlined_call_operand.hbm [shape: f32[32,32], index: 1, kind: input, shape index: {}]   ;;  %s368_s2 = inlined_call_operand.vmem [shape: f32[1,32], index: 2, kind: input, shape index: {}]   ;;  %s369_s3 = inlined_call_operand.hbm [shape: f32[16,32], index: 3, kind: output, shape index: {}]  }
   0x1   :  { %9 = vsyncpa [#allocation7], 0 }
   0x2   :  { %10 = vsyncpa [#allocation5], 0  ;;  %s284_s12 = smov [#allocation3]   ;;  %s212_s16 = scalar_lea.hbm %s366_s0, 256 }
   0x3   :  { %s16_s13 = sshll.u32 %s284_s12, 4  ;;  %p213_p0 = scmp.ne.s32.totalorder %s366_s0, %s212_s16  ;;  %s17_s13 = int_to_ptr.vmem [resolvable:$true] %s16_s13 }
   0x4   :  { %p216_p1 = scmp.lt.u32.totalorder %s212_s16, %s366_s0 }
   0x6   :  { %p218_p2 = pnand %p216_p1, %p213_p0 }
   0x8   :  { %221 = shalt.err (!%p218_p2)
}
   0x9   :  { %s222_s21 = scalar_lea.vmem %s17_s13, 256  ;;  %p227_p4 = scmp.lt.s32.totalorder %s17_s13, %s17_s13 }
   0xa   :  { %p223_p3 = scmp.ne.s32.totalorder %s17_s13, %s222_s21  ;;  %p228_p5 = scmp.lt.s32.totalorder %s222_s21, %s222_s21 }
   0xc   :  { %p229_p6 = por %p228_p5, %p227_p4 }
   0xe   :  { %p230_p7 = pnand %p229_p6, %p223_p3 }
  0x10   :  { %233 = shalt.err (!%p230_p7)
}
  0x11   :  { %s285_s22 = smov 128   ;;  %s286_s23 = smov 8  }
  0x12   :  { %22 = dma.hbm_to_vmem [thread:$0]  %s366_s0, 256, %s17_s13, [#allocation4], %s285_s22, %s285_s22, %s286_s23  }
  0x13   :  { %s287_s26 = smov [#allocation6]   ;;  %s234_s30 = scalar_lea.hbm %s367_s1, 512 }
  0x14   :  { %s28_s27 = sshll.u32 %s287_s26, 4  ;;  %p235_p8 = scmp.ne.s32.totalorder %s367_s1, %s234_s30  ;;  %s29_s27 = int_to_ptr.vmem [resolvable:$true] %s28_s27 }
  0x15   :  { %p238_p9 = scmp.lt.u32.totalorder %s234_s30, %s367_s1 }
  0x17   :  { %p240_p10 = pnand %p238_p9, %p235_p8 }
  0x19   :  { %243 = shalt.err (!%p240_p10)
}
  0x1a   :  { %s244_s8 = scalar_lea.vmem %s29_s27, 512  ;;  %p249_p12 = scmp.lt.s32.totalorder %s29_s27, %s29_s27 }
  0x1b   :  { %p245_p11 = scmp.ne.s32.totalorder %s29_s27, %s244_s8  ;;  %p250_p13 = scmp.lt.s32.totalorder %s244_s8, %s244_s8 }
  0x1d   :  { %p251_p0 = por %p250_p13, %p249_p12 }
  0x1f   :  { %p252_p1 = pnand %p251_p0, %p245_p11 }
  0x21   :  { %255 = shalt.err (!%p252_p1)
}
  0x22   :  { %34 = dma.hbm_to_vmem [thread:$0]  %s367_s1, 512, %s29_s27, [#allocation7], %s285_s22, %s285_s22, %s286_s23  }
  0x23   :  { %278 = dma.done.wait [#allocation4], 256  }
  0x24   :  { %279 = vsyncadd [#allocation4], 4294967040 }
  0x25   :  { %280 = dma.done.wait [#allocation7], 512  }
  0x26   :  { %281 = vsyncadd [#allocation7], 4294966784  ;;  %vm47_vm0 = vcmask 261120   ;;  %v288_v0 = vmov 0.0   ;;  %v54_v1 = vld [vmem:[#allocation6] sm:$0xff]  ;;  %v55_v2 = vld [vmem:[#allocation6 + $0x8] sm:$0xff] }
  0x27   :  { %49 = vst.msk [vmem:[#allocation2 + $0x8] sm:$0xff] %vm47_vm0, %v288_v0  ;;  %48 = vst.msk [vmem:[#allocation2] sm:$0xff] %vm47_vm0, %v288_v0  ;;  %v56_v3 = vld [vmem:[#allocation6 + $0x10] sm:$0xff]  ;;  %v198_v4 = vpack.c.bf16 %v55_v2, %v54_v1  ;;  %v57_v5 = vld [vmem:[#allocation6 + $0x18] sm:$0xff]  ;;  %s289_s11 = smov [#allocation8]  }
  0x28   :  { %v52_v6 = vld [vmem:[#allocation3] sm:$0xff]  ;;  %v202_v7 = vpack.c.bf16 %v57_v5, %v56_v3  ;;  %v53_v8 = vld [vmem:[#allocation3 + $0x8] sm:$0xff]  ;;  %v180_v15 = vld [vmem:[%s368_s2] ss:$0 sm:$0xff]  ;;  %s165_s12 = sshll.u32 %s289_s11, 4  ;;  %s166_s12 = int_to_ptr.vmem [resolvable:$true] %s165_s12 }
  0x29   :  { %195 = vmatprep.mubr.msk.f32.mxu0 %vm47_vm0, %v52_v6  ;;  %199 = vmatprep.subr.bf16.mxu0 %v198_v4  ;;  %s256_s13 = scalar_lea.vmem %s166_s12, 256  ;;  %p261_p3 = scmp.lt.s32.totalorder %s166_s12, %s166_s12 }
  0x2a   :  { %201 = vmatpush3.bf16.msra.mxu0 %v198_v4  ;;  %p257_p2 = scmp.ne.s32.totalorder %s166_s12, %s256_s13  ;;  %p262_p4 = scmp.lt.s32.totalorder %s256_s13, %s256_s13 }
  0x2b   :  { %203 = vmatprep.subr.bf16.mxu0 %v202_v7 }
  0x2c   :  { %p263_p5 = por %p262_p4, %p261_p3 }
  0x2e   :  { %205 = vmatpush3.bf16.msra.mxu0 %v202_v7  ;;  %v51_v9 = vld [vmem:[#allocation2 + $0x8] sm:$0xff]  ;;  %v50_v10 = vld [vmem:[#allocation2] sm:$0xff]  ;;  %p264_p6 = pnand %p263_p5, %p257_p2 }
  0x31   :  { %196 = vmatmul.mubr.msk.f32.vlgmr.msra.gmra.mrb[0].mxu0 %vm47_vm0, %v53_v8 }
 0x104   :  { %v197_v11 = vpop.f32.mrb[0].mxu0 }
 0x105   :  { %v141_v12 = vadd.f32 %v197_v11, %v51_v9  ;;  %v131_v13 = vpop.f32.mrb[1].mxu0 }
 0x106   :  { %v140_v14 = vadd.f32 %v131_v13, %v50_v10 }
 0x107   :  { %143 = vst.msk [vmem:[#allocation2 + $0x8] sm:$0xff] %vm47_vm0, %v141_v12 }
 0x108   :  { %142 = vst.msk [vmem:[#allocation2] sm:$0xff] %vm47_vm0, %v140_v14 }
 0x10e   :  { %v148_v16 = vld [vmem:[#allocation2 + $0x8] sm:$0xff] }
 0x10f   :  { %v147_v17 = vld [vmem:[#allocation2] sm:$0xff]  ;;  %v157_v18 = vadd.f32 %v180_v15, %v148_v16 }
 0x110   :  { %v156_v19 = vadd.f32 %v180_v15, %v147_v17 }
 0x111   :  { %159 = vst.msk [vmem:[#allocation8 + $0x8] sm:$0xff] %vm47_vm0, %v157_v18 }
 0x112   :  { %158 = vst.msk [vmem:[#allocation8] sm:$0xff] %vm47_vm0, %v156_v19 }
 0x113   :  { %267 = shalt.err (!%p264_p6)
}
 0x114   :  { %s268_s15 = scalar_lea.hbm %s369_s3, 256 }
 0x115   :  { %p269_p7 = scmp.ne.s32.totalorder %s369_s3, %s268_s15  ;;  %p272_p8 = scmp.lt.u32.totalorder %s268_s15, %s369_s3 }
 0x117   :  { %p274_p9 = pnand %p272_p8, %p269_p7 }
 0x119   :  { %277 = shalt.err (!%p274_p9)
}
 0x11a   :  { %171 = dma.vmem_to_hbm [thread:$0]  %s166_s12, 256, %s369_s3, [#allocation5], %s285_s22, %s285_s22, %s286_s23  }
 0x11b   :  { %282 = dma.done.wait [#allocation5], 256  }
 0x11c   :  { %283 = vsyncadd [#allocation5], 4294967040 }
 0x11d   :  { %175 = vsyncpa [#allocation4], 1 }
 0x11e   :  { %176 = vsyncpa [#allocation7], 1 }
 0x11f   :  { %177 = vsyncpa [#allocation5], 1 }

</bundles_post_ra>
